<compile_context>
chip_gen: v7x
topology: tpu7x:2x2x1
jax: 0.10.0
libtpu: 0.0.40
codegen_flags: <defaults>
</compile_context>

<pallas_src>
import functools

import jax
import jax.numpy as jnp
from jax.experimental import pallas as pl
from jax.experimental.pallas import tpu as pltpu


def _attn_tile_kernel(enc_ref, dec_ref, we_ref, wd_ref, v_ref,
                      p_ref, m_ref, l_ref, ctx_ref, *, seq, padded):
    """One independent seq tile: logits, local softmax stats, partial context."""
    i = pl.program_id(0)
    ts = enc_ref.shape[0]

    enc = enc_ref[...]                                     # (ts, dim) stream dtype
    dec = dec_ref[...]                                     # (ts, dim)

    # scores = enc @ We^T + dec @ Wd^T ; weights arrive pre-transposed (in,out),
    # so both are standard (ts,dim)@(dim,dim) MXU contractions (no transposes).
    s = jnp.dot(enc, we_ref[...], preferred_element_type=jnp.float32)
    s = s + jnp.dot(dec, wd_ref[...], preferred_element_type=jnp.float32)
    t = jnp.tanh(s)                                        # (ts, dim) f32

    # e = v . tanh(scores)^T -> (1, ts): logits directly lane-dense.
    # Same trans-rhs contraction pattern as flash attention's q @ k^T.
    e = jax.lax.dot_general(v_ref[...], t, (((1,), (1,)), ((), ())),
                            preferred_element_type=jnp.float32)       # (1, ts)

    if padded:                                             # static flag
        pos = jax.lax.broadcasted_iota(jnp.int32, (1, ts), 1) + i * ts
        e = jnp.where(pos < seq, e, -jnp.inf)

    # Per-tile (local) softmax pieces; the global combine is a tiny XLA epilogue.
    m_i = jnp.max(e, axis=1, keepdims=True)                # (1, 1)
    p = jnp.exp(e - m_i)                                   # (1, ts); 0 at pad rows
    l_i = jnp.sum(p, axis=1, keepdims=True)                # (1, 1)

    if padded:
        # Boundary-block rows beyond seq hold unspecified data; zero them so
        # 0 * garbage cannot poison the context contraction.
        rpos = jax.lax.broadcasted_iota(jnp.int32, (ts, 1), 0) + i * ts
        enc = jnp.where(rpos < seq, enc, jnp.zeros_like(enc))

    # Partial context on the MXU: (1, ts) @ (ts, dim), seq on the K axis.
    ctx = jax.lax.dot_general(p.astype(enc.dtype), enc, (((1,), (0,)), ((), ())),
                              preferred_element_type=jnp.float32)     # (1, dim)

    p_ref[0] = p
    m_ref[0] = m_i
    l_ref[0] = l_i
    ctx_ref[0] = ctx


def _sublane_multiple(itemsize):
    if itemsize >= 4:
        return 8
    if itemsize == 2:
        return 16
    return 32


def _round_up(x, m):
    return -(-x // m) * m


def attention_module(decoder_hidden, encoder_out, w_enc, w_dec, v_att,
                     *, seq_tile=None, stream_dtype=None):
    """
    decoder_hidden, encoder_out: (seq, batch, dim) with batch == 1
    w_enc, w_dec: (dim, dim)   (PyTorch nn.Linear weight layout: [out, in])
    v_att: (1, dim)
    Returns (context (1, 1, dim), alpha (1, batch, seq)) — same as the torch module.
    """
    seq, batch, dim = encoder_out.shape
    assert batch == 1, "module's reshape(1, 1, dim) implies batch == 1"
    # TODO(synk): a real batch > 1 would become a second 'parallel' grid axis
    # rather than vmapping this wrapper.

    out_dtype = encoder_out.dtype
    sdt = jnp.dtype(stream_dtype) if stream_dtype is not None else jnp.dtype(out_dtype)

    enc2d = encoder_out[:, 0, :].astype(sdt)               # (seq, dim)
    dec2d = decoder_hidden[:, 0, :].astype(sdt)
    we_t = jnp.transpose(w_enc).astype(sdt)                # (in, out): one-time tiny transpose
    wd_t = jnp.transpose(w_dec).astype(sdt)
    v = v_att.astype(jnp.float32)                          # (1, dim)

    itemsize = sdt.itemsize
    sub = _sublane_multiple(itemsize)

    # --- VMEM-aware seq-tile selection -------------------------------------
    try:
        info = pltpu.get_tpu_info()
        vmem_cap = int(getattr(info, "vmem_capacity_bytes", 0)) or (64 << 20)
    except Exception:  # pragma: no cover - conservative (v7x-sized) fallback
        vmem_cap = 64 << 20

    # Per-row tile footprint: 2 streams x double-buffer + ~2x f32 scores/tanh.
    per_row = 4 * dim * itemsize + 8 * dim + 16
    tile_budget = max(4 << 20, min(int(0.4 * vmem_cap), 48 << 20))
    ts = tile_budget // per_row
    if seq_tile is not None:
        ts = min(ts, int(seq_tile))
    ts = int(max(sub, min(2048, ts)))
    if ts >= seq:
        ts = _round_up(seq, sub)                           # single-tile path, dtype-aware
    else:
        ts = max(128, (ts // 128) * 128)                   # lane-dense logit stores
    nt = -(-seq // ts)
    padded = (nt * ts != seq)

    # vmem_limit from the actual footprint (plus headroom), capped per generation.
    weight_bytes = 2 * 2 * dim * dim * itemsize + 2 * dim * 4
    out_block_bytes = 2 * 4 * (ts + dim + 2)
    needed = ts * per_row + weight_bytes + out_block_bytes + (4 << 20)
    vmem_limit = int(min(int(0.75 * vmem_cap), max(32 << 20, needed)))

    kernel = functools.partial(_attn_tile_kernel, seq=seq, padded=padded)

    p_all, m_all, l_all, ctx_all = pl.pallas_call(
        kernel,
        out_shape=(jax.ShapeDtypeStruct((nt, 1, ts), jnp.float32),    # exp(e - m_i)
                   jax.ShapeDtypeStruct((nt, 1, 1), jnp.float32),     # m_i
                   jax.ShapeDtypeStruct((nt, 1, 1), jnp.float32),     # l_i
                   jax.ShapeDtypeStruct((nt, 1, dim), jnp.float32)),  # p_i @ enc_i
        grid_spec=pltpu.PrefetchScalarGridSpec(
            num_scalar_prefetch=0,
            grid=(nt,),
            in_specs=[pl.BlockSpec((ts, dim), lambda i: (i, 0)),      # enc, streamed
                      pl.BlockSpec((ts, dim), lambda i: (i, 0)),      # dec, streamed
                      pl.BlockSpec((dim, dim), lambda i: (0, 0)),     # We^T, resident
                      pl.BlockSpec((dim, dim), lambda i: (0, 0)),     # Wd^T, resident
                      pl.BlockSpec((1, dim), lambda i: (0, 0))],      # v, resident
            out_specs=(pl.BlockSpec((1, 1, ts), lambda i: (i, 0, 0)),
                       pl.BlockSpec((1, 1, 1), lambda i: (i, 0, 0)),
                       pl.BlockSpec((1, 1, 1), lambda i: (i, 0, 0)),
                       pl.BlockSpec((1, 1, dim), lambda i: (i, 0, 0)))),
        compiler_params=pltpu.CompilerParams(
            dimension_semantics=("parallel",),             # shards across v7x's 2 TCs
            vmem_limit_bytes=vmem_limit),
    )(enc2d, dec2d, we_t, wd_t, v)

    # --- tiny XLA epilogue: exact combine of the per-tile softmax pieces -----
    m_all = m_all.reshape(nt)
    l_all = l_all.reshape(nt)
    m = jnp.max(m_all)
    scale = jnp.exp(m_all - m)                             # (nt,)
    denom = jnp.sum(l_all * scale)
    inv_l = 1.0 / denom

    context = (jnp.sum(ctx_all.reshape(nt, dim) * scale[:, None], axis=0)
               * inv_l).astype(out_dtype).reshape(1, 1, dim)
    alpha = (p_all.reshape(nt, ts) * (scale * inv_l)[:, None]).reshape(nt * ts)
    alpha = alpha[:seq].astype(out_dtype).reshape(1, batch, seq)
    return context, alpha


def _reference(decoder_hidden, encoder_out, w_enc, w_dec, v_att):
    enc = jnp.transpose(encoder_out, (1, 0, 2)).astype(jnp.float32)
    dec = jnp.transpose(decoder_hidden, (1, 0, 2)).astype(jnp.float32)
    scores = enc @ w_enc.T + dec @ w_dec.T
    e = jnp.tanh(scores) @ v_att.T                 # (batch, seq, 1)
    alpha = jax.nn.softmax(e, axis=1)
    ctx = jnp.sum(alpha * enc, axis=1).reshape(1, 1, enc.shape[-1])
    return ctx, jnp.transpose(alpha, (2, 0, 1))


if __name__ == "__main__":
    def _run_case(seq, dim, key, seq_tile=None, stream_dtype=None,
                  atol=2e-3, rtol=2e-3):
        batch = 1
        k1, k2, k3, k4, k5 = jax.random.split(key, 5)
        decoder_hidden = jax.random.normal(k1, (seq, batch, dim), jnp.float32)
        encoder_out = jax.random.normal(k2, (seq, batch, dim), jnp.float32)
        bound = 1.0 / (dim ** 0.5)
        w_enc = jax.random.uniform(k3, (dim, dim), jnp.float32, -bound, bound)
        w_dec = jax.random.uniform(k4, (dim, dim), jnp.float32, -bound, bound)
        v_att = jax.random.uniform(k5, (1, dim), jnp.float32, -bound, bound)

        context, alpha = attention_module(decoder_hidden, encoder_out,
                                          w_enc, w_dec, v_att,
                                          seq_tile=seq_tile,
                                          stream_dtype=stream_dtype)
        jax.block_until_ready((context, alpha))

        ref_ctx, ref_alpha = _reference(decoder_hidden, encoder_out,
                                        w_enc, w_dec, v_att)
        assert context.shape == (1, 1, dim) and alpha.shape == (1, batch, seq)
        assert jnp.allclose(jnp.sum(alpha.astype(jnp.float32)), 1.0, atol=1e-3)
        assert jnp.allclose(context, ref_ctx, atol=atol, rtol=rtol), "context mismatch"
        assert jnp.allclose(alpha, ref_alpha, atol=atol, rtol=rtol), "alpha mismatch"

    key = jax.random.PRNGKey(0)
    ka, kb, kc = jax.random.split(key, 3)
    _run_case(seq=8, dim=32, key=ka)                                  # single-tile path
    _run_case(seq=300, dim=128, key=kb, seq_tile=128)                 # multi-tile + boundary mask
    _run_case(seq=300, dim=128, key=kc, seq_tile=128,                 # bf16 streaming path
              stream_dtype=jnp.bfloat16, atol=6e-2, rtol=6e-2)
    print("KERNEL_OK")
</pallas_src>

<mosaic_0001>
module attributes {stable_mosaic.version = 11 : i64} {
  func.func @_attn_tile_kernel(%arg0: i32, %arg1: memref<8x32xf32, #tpu.memory_space<vmem>>, %arg2: memref<8x32xf32, #tpu.memory_space<vmem>>, %arg3: memref<32x32xf32, #tpu.memory_space<vmem>>, %arg4: memref<32x32xf32, #tpu.memory_space<vmem>>, %arg5: memref<1x32xf32, #tpu.memory_space<vmem>>, %arg6: memref<1x1x8xf32, #tpu.memory_space<vmem>>, %arg7: memref<1x1x1xf32, #tpu.memory_space<vmem>>, %arg8: memref<1x1x1xf32, #tpu.memory_space<vmem>>, %arg9: memref<1x1x32xf32, #tpu.memory_space<vmem>>) attributes {dimension_semantics = [#tpu.dimension_semantics<parallel>], iteration_bounds = array<i64: 1>, scalar_prefetch = 0 : i64, scratch_operands = 0 : i64, tpu.core_type = #tpu.core_type<tc>, window_params = [{transform_indices = @transform_0, window_bounds = array<i64: 8, 32>}, {transform_indices = @transform_1, window_bounds = array<i64: 8, 32>}, {pipeline_mode = #tpu.pipeline_mode<synchronous>, transform_indices = @transform_2, window_bounds = array<i64: 32, 32>}, {pipeline_mode = #tpu.pipeline_mode<synchronous>, transform_indices = @transform_3, window_bounds = array<i64: 32, 32>}, {pipeline_mode = #tpu.pipeline_mode<synchronous>, transform_indices = @transform_4, window_bounds = array<i64: 1, 32>}, {transform_indices = @transform_5, window_bounds = array<i64: 1, 1, 8>}, {transform_indices = @transform_6, window_bounds = array<i64: 1, 1, 1>}, {transform_indices = @transform_7, window_bounds = array<i64: 1, 1, 1>}, {transform_indices = @transform_8, window_bounds = array<i64: 1, 1, 32>}]} {
    %c0 = arith.constant 0 : index
    %c0_0 = arith.constant 0 : index
    %0 = vector.load %arg1[%c0, %c0_0] : memref<8x32xf32, #tpu.memory_space<vmem>>, vector<8x32xf32>
    %c0_1 = arith.constant 0 : index
    %c0_2 = arith.constant 0 : index
    %1 = vector.load %arg2[%c0_1, %c0_2] : memref<8x32xf32, #tpu.memory_space<vmem>>, vector<8x32xf32>
    %c0_3 = arith.constant 0 : index
    %c0_4 = arith.constant 0 : index
    %2 = vector.load %arg3[%c0_3, %c0_4] : memref<32x32xf32, #tpu.memory_space<vmem>>, vector<32x32xf32>
    %cst = arith.constant dense<0.000000e+00> : vector<8x32xf32>
    %3 = tpu.matmul %0, %2, %cst {dimension_numbers = #tpu.dot_dimension_numbers<[1], [0], [0], [1], [0, 0, 1, 1], [], []>} : vector<8x32xf32>, vector<32x32xf32>, vector<8x32xf32> -> vector<8x32xf32>
    %c0_5 = arith.constant 0 : index
    %c0_6 = arith.constant 0 : index
    %4 = vector.load %arg4[%c0_5, %c0_6] : memref<32x32xf32, #tpu.memory_space<vmem>>, vector<32x32xf32>
    %cst_7 = arith.constant dense<0.000000e+00> : vector<8x32xf32>
    %5 = tpu.matmul %1, %4, %cst_7 {dimension_numbers = #tpu.dot_dimension_numbers<[1], [0], [0], [1], [0, 0, 1, 1], [], []>} : vector<8x32xf32>, vector<32x32xf32>, vector<8x32xf32> -> vector<8x32xf32>
    %6 = arith.addf %3, %5 : vector<8x32xf32>
    %7 = math.tanh %6 : vector<8x32xf32>
    %c0_8 = arith.constant 0 : index
    %c0_9 = arith.constant 0 : index
    %8 = vector.load %arg5[%c0_8, %c0_9] : memref<1x32xf32, #tpu.memory_space<vmem>>, vector<1x32xf32>
    %cst_10 = arith.constant dense<0.000000e+00> : vector<1x8xf32>
    %9 = tpu.matmul %8, %7, %cst_10 {dimension_numbers = #tpu.dot_dimension_numbers<[1], [1], [0], [0], [0, 0, 1, 0], [], []>} : vector<1x32xf32>, vector<8x32xf32>, vector<1x8xf32> -> vector<1x8xf32>
    %cst_11 = arith.constant dense<0xFF800000> : vector<1xf32>
    %10 = vector.multi_reduction <maximumf>, %9, %cst_11 [1] : vector<1x8xf32> to vector<1xf32>
    %11 = vector.shape_cast %10 : vector<1xf32> to vector<1x1xf32>
    %12 = vector.broadcast %11 : vector<1x1xf32> to vector<1x8xf32>
    %13 = arith.subf %9, %12 : vector<1x8xf32>
    %14 = math.exp %13 : vector<1x8xf32>
    %cst_12 = arith.constant dense<0.000000e+00> : vector<1xf32>
    %15 = vector.multi_reduction <add>, %14, %cst_12 [1] : vector<1x8xf32> to vector<1xf32>
    %16 = vector.shape_cast %15 : vector<1xf32> to vector<1x1xf32>
    %cst_13 = arith.constant dense<0.000000e+00> : vector<1x32xf32>
    %17 = tpu.matmul %14, %0, %cst_13 {dimension_numbers = #tpu.dot_dimension_numbers<[1], [0], [0], [1], [0, 0, 1, 1], [], []>} : vector<1x8xf32>, vector<8x32xf32>, vector<1x32xf32> -> vector<1x32xf32>
    %c0_14 = arith.constant 0 : index
    %c0_15 = arith.constant 0 : index
    %c0_16 = arith.constant 0 : index
    %18 = vector.load %arg6[%c0_14, %c0_15, %c0_16] : memref<1x1x8xf32, #tpu.memory_space<vmem>>, vector<1x1x8xf32>
    %19 = vector.shape_cast %18 : vector<1x1x8xf32> to vector<1x8xf32>
    %20 = vector.shape_cast %14 : vector<1x8xf32> to vector<1x1x8xf32>
    tpu.vector_store %arg6[%c0_14, %c0_15, %c0_16], %20 {strides = array<i32>} : memref<1x1x8xf32, #tpu.memory_space<vmem>>, vector<1x1x8xf32>,
    %c0_17 = arith.constant 0 : index
    %c0_18 = arith.constant 0 : index
    %c0_19 = arith.constant 0 : index
    %21 = vector.load %arg7[%c0_17, %c0_18, %c0_19] : memref<1x1x1xf32, #tpu.memory_space<vmem>>, vector<1x1x1xf32>
    %22 = vector.shape_cast %21 : vector<1x1x1xf32> to vector<1x1xf32>
    %23 = vector.shape_cast %11 : vector<1x1xf32> to vector<1x1x1xf32>
    tpu.vector_store %arg7[%c0_17, %c0_18, %c0_19], %23 {strides = array<i32>} : memref<1x1x1xf32, #tpu.memory_space<vmem>>, vector<1x1x1xf32>,
    %c0_20 = arith.constant 0 : index
    %c0_21 = arith.constant 0 : index
    %c0_22 = arith.constant 0 : index
    %24 = vector.load %arg8[%c0_20, %c0_21, %c0_22] : memref<1x1x1xf32, #tpu.memory_space<vmem>>, vector<1x1x1xf32>
    %25 = vector.shape_cast %24 : vector<1x1x1xf32> to vector<1x1xf32>
    %26 = vector.shape_cast %16 : vector<1x1xf32> to vector<1x1x1xf32>
    tpu.vector_store %arg8[%c0_20, %c0_21, %c0_22], %26 {strides = array<i32>} : memref<1x1x1xf32, #tpu.memory_space<vmem>>, vector<1x1x1xf32>,
    %c0_23 = arith.constant 0 : index
    %c0_24 = arith.constant 0 : index
    %c0_25 = arith.constant 0 : index
    %27 = vector.load %arg9[%c0_23, %c0_24, %c0_25] : memref<1x1x32xf32, #tpu.memory_space<vmem>>, vector<1x1x32xf32>
    %28 = vector.shape_cast %27 : vector<1x1x32xf32> to vector<1x32xf32>
    %29 = vector.shape_cast %17 : vector<1x32xf32> to vector<1x1x32xf32>
    tpu.vector_store %arg9[%c0_23, %c0_24, %c0_25], %29 {strides = array<i32>} : memref<1x1x32xf32, #tpu.memory_space<vmem>>, vector<1x1x32xf32>,
    return
  }
  func.func @transform_0(%arg0: i32) -> (i32, i32) {
    %c0_i32 = arith.constant 0 : i32
    %c0_i32_0 = arith.constant 0 : i32
    return %arg0, %c0_i32 : i32, i32
  }
  func.func @transform_1(%arg0: i32) -> (i32, i32) {
    %c0_i32 = arith.constant 0 : i32
    %c0_i32_0 = arith.constant 0 : i32
    return %arg0, %c0_i32 : i32, i32
  }
  func.func @transform_2(%arg0: i32) -> (i32, i32) {
    %c0_i32 = arith.constant 0 : i32
    %c0_i32_0 = arith.constant 0 : i32
    %c0_i32_1 = arith.constant 0 : i32
    return %c0_i32, %c0_i32_0 : i32, i32
  }
  func.func @transform_3(%arg0: i32) -> (i32, i32) {
    %c0_i32 = arith.constant 0 : i32
    %c0_i32_0 = arith.constant 0 : i32
    %c0_i32_1 = arith.constant 0 : i32
    return %c0_i32, %c0_i32_0 : i32, i32
  }
  func.func @transform_4(%arg0: i32) -> (i32, i32) {
    %c0_i32 = arith.constant 0 : i32
    %c0_i32_0 = arith.constant 0 : i32
    %c0_i32_1 = arith.constant 0 : i32
    return %c0_i32, %c0_i32_0 : i32, i32
  }
  func.func @transform_5(%arg0: i32) -> (i32, i32, i32) {
    %c0_i32 = arith.constant 0 : i32
    %c0_i32_0 = arith.constant 0 : i32
    %c0_i32_1 = arith.constant 0 : i32
    return %arg0, %c0_i32, %c0_i32_0 : i32, i32, i32
  }
  func.func @transform_6(%arg0: i32) -> (i32, i32, i32) {
    %c0_i32 = arith.constant 0 : i32
    %c0_i32_0 = arith.constant 0 : i32
    %c0_i32_1 = arith.constant 0 : i32
    return %arg0, %c0_i32, %c0_i32_0 : i32, i32, i32
  }
  func.func @transform_7(%arg0: i32) -> (i32, i32, i32) {
    %c0_i32 = arith.constant 0 : i32
    %c0_i32_0 = arith.constant 0 : i32
    %c0_i32_1 = arith.constant 0 : i32
    return %arg0, %c0_i32, %c0_i32_0 : i32, i32, i32
  }
  func.func @transform_8(%arg0: i32) -> (i32, i32, i32) {
    %c0_i32 = arith.constant 0 : i32
    %c0_i32_0 = arith.constant 0 : i32
    %c0_i32_1 = arith.constant 0 : i32
    return %arg0, %c0_i32, %c0_i32_0 : i32, i32, i32
  }
}

</mosaic_0001>

<bundles_post_ra>
// kernel: tpu_custom_call.1
= control target key start
LH: loop header
LB: loop body
LE: loop exit
PB: predicated region body
PF: predicated region fallthrough
CT: control target
= control target key end

     0   :  { %14 = vsyncpa [#allocation3], 0  ;;  %s898_s0 = inlined_call_operand.hbm [shape: f32[8,32], index: 0, kind: input, shape index: {}]   ;;  %s899_s1 = inlined_call_operand.hbm [shape: f32[8,32], index: 1, kind: input, shape index: {}]   ;;  %s900_s2 = inlined_call_operand.hbm [shape: f32[32,32], index: 2, kind: input, shape index: {}]   ;;  %s901_s3 = inlined_call_operand.hbm [shape: f32[32,32], index: 3, kind: input, shape index: {}]   ;;  %s902_s4 = inlined_call_operand.vmem [shape: f32[1,32], index: 4, kind: input, shape index: {}]   ;;  %s903_s5 = inlined_call_operand.hbm [shape: f32[1,1,8], index: 5, kind: output, shape index: {0}]   ;;  %s904_s6 = inlined_call_operand.hbm [shape: f32[1,1,1], index: 6, kind: output, shape index: {1}]   ;;  %s905_s7 = inlined_call_operand.hbm [shape: f32[1,1,1], index: 7, kind: output, shape index: {2}]   ;;  %s906_s8 = inlined_call_operand.hbm [shape: f32[1,1,32], index: 8, kind: output, shape index: {3}]  }
   0x1   :  { %15 = vsyncpa [#allocation6], 0 }
   0x2   :  { %16 = vsyncpa [#allocation9], 0 }
   0x3   :  { %17 = vsyncpa [#allocation4], 0 }
   0x4   :  { %18 = vsyncpa [#allocation12], 0 }
   0x5   :  { %19 = vsyncpa [#allocation15], 0  ;;  %s731_s27 = smov [#allocation5]   ;;  %s732_s29 = smov [#allocation2]  }
   0x6   :  { %s36_s28 = sshll.u32 %s731_s27, 4  ;;  %s26_s30 = sshll.u32 %s732_s29, 4  ;;  %s37_s28 = int_to_ptr.vmem [resolvable:$true] %s36_s28  ;;  %s27_s30 = int_to_ptr.vmem [resolvable:$true] %s26_s30 }
   0x7   :  { %s543_s11 = scalar_lea.hbm %s899_s1, 128 }
   0x8   :  { %p544_p0 = scmp.ne.s32.totalorder %s899_s1, %s543_s11  ;;  %p547_p1 = scmp.lt.u32.totalorder %s543_s11, %s899_s1 }
   0xa   :  { %p549_p2 = pnand %p547_p1, %p544_p0 }
   0xc   :  { %552 = shalt.err (!%p549_p2)
}
   0xd   :  { %s553_s16 = scalar_lea.vmem %s37_s28, 128  ;;  %p558_p4 = scmp.lt.s32.totalorder %s37_s28, %s37_s28 }
   0xe   :  { %p554_p3 = scmp.ne.s32.totalorder %s37_s28, %s553_s16  ;;  %p559_p5 = scmp.lt.s32.totalorder %s553_s16, %s553_s16 }
  0x10   :  { %p560_p6 = por %p559_p5, %p558_p4 }
  0x12   :  { %p561_p7 = pnand %p560_p6, %p554_p3 }
  0x14   :  { %564 = shalt.err (!%p561_p7)
}
  0x15   :  { %39 = dma.hbm_to_vmem [thread:$0]  %s899_s1, 128, %s37_s28, [#allocation6]  }
  0x16   :  { %s565_s21 = scalar_lea.hbm %s898_s0, 128 }
  0x17   :  { %p566_p8 = scmp.ne.s32.totalorder %s898_s0, %s565_s21  ;;  %p569_p9 = scmp.lt.u32.totalorder %s565_s21, %s898_s0 }
  0x19   :  { %p571_p10 = pnand %p569_p9, %p566_p8 }
  0x1b   :  { %574 = shalt.err (!%p571_p10)
}
  0x1c   :  { %s575_s26 = scalar_lea.vmem %s27_s30, 128  ;;  %p580_p12 = scmp.lt.s32.totalorder %s27_s30, %s27_s30 }
  0x1d   :  { %p576_p11 = scmp.ne.s32.totalorder %s27_s30, %s575_s26  ;;  %p581_p13 = scmp.lt.s32.totalorder %s575_s26, %s575_s26 }
  0x1f   :  { %p582_p0 = por %p581_p13, %p580_p12 }
  0x21   :  { %p583_p1 = pnand %p582_p0, %p576_p11 }
  0x23   :  { %586 = shalt.err (!%p583_p1)
}
  0x24   :  { %29 = dma.hbm_to_vmem [thread:$0]  %s898_s0, 128, %s27_s30, [#allocation3]  }
  0x25   :  { %s733_s28 = smov [#allocation7]   ;;  %s587_s11 = scalar_lea.hbm %s900_s2, 512 }
  0x26   :  { %s45_s29 = sshll.u32 %s733_s28, 4  ;;  %p588_p2 = scmp.ne.s32.totalorder %s900_s2, %s587_s11  ;;  %s46_s29 = int_to_ptr.vmem [resolvable:$true] %s45_s29 }
  0x27   :  { %p591_p3 = scmp.lt.u32.totalorder %s587_s11, %s900_s2 }
  0x29   :  { %p593_p4 = pnand %p591_p3, %p588_p2 }
  0x2b   :  { %596 = shalt.err (!%p593_p4)
}
  0x2c   :  { %s597_s16 = scalar_lea.vmem %s46_s29, 512  ;;  %p602_p6 = scmp.lt.s32.totalorder %s46_s29, %s46_s29 }
  0x2d   :  { %p598_p5 = scmp.ne.s32.totalorder %s46_s29, %s597_s16  ;;  %p603_p7 = scmp.lt.s32.totalorder %s597_s16, %s597_s16 }
  0x2f   :  { %p604_p8 = por %p603_p7, %p602_p6 }
  0x31   :  { %p605_p9 = pnand %p604_p8, %p598_p5 }
  0x33   :  { %608 = shalt.err (!%p605_p9)
}
  0x34   :  { %s734_s0 = smov 128   ;;  %s735_s30 = smov 8  }
  0x35   :  { %51 = dma.hbm_to_vmem [thread:$0]  %s900_s2, 512, %s46_s29, [#allocation6], %s734_s0, %s734_s0, %s735_s30  }
  0x36   :  { %s736_s19 = smov [#allocation8]   ;;  %s609_s23 = scalar_lea.hbm %s901_s3, 512 }
  0x37   :  { %s57_s20 = sshll.u32 %s736_s19, 4  ;;  %p610_p10 = scmp.ne.s32.totalorder %s901_s3, %s609_s23  ;;  %s58_s20 = int_to_ptr.vmem [resolvable:$true] %s57_s20 }
  0x38   :  { %p613_p11 = scmp.lt.u32.totalorder %s609_s23, %s901_s3 }
  0x3a   :  { %p615_p12 = pnand %p613_p11, %p610_p10 }
  0x3c   :  { %618 = shalt.err (!%p615_p12)
}
  0x3d   :  { %s619_s27 = scalar_lea.vmem %s58_s20, 512  ;;  %p624_p0 = scmp.lt.s32.totalorder %s58_s20, %s58_s20 }
  0x3e   :  { %p620_p13 = scmp.ne.s32.totalorder %s58_s20, %s619_s27  ;;  %p625_p1 = scmp.lt.s32.totalorder %s619_s27, %s619_s27 }
  0x40   :  { %p626_p2 = por %p625_p1, %p624_p0 }
  0x42   :  { %p627_p3 = pnand %p626_p2, %p620_p13 }
  0x44   :  { %630 = shalt.err (!%p627_p3)
}
  0x45   :  { %63 = dma.hbm_to_vmem [thread:$0]  %s901_s3, 512, %s58_s20, [#allocation9], %s734_s0, %s734_s0, %s735_s30  }
  0x46   :  { %719 = dma.done.wait [#allocation3], 128  }
  0x47   :  { %720 = vsyncadd [#allocation3], 4294967168 }
  0x48   :  { %721 = dma.done.wait [#allocation6], 640  }
  0x49   :  { %722 = vsyncadd [#allocation6], 4294966656 }
  0x4a   :  { %723 = dma.done.wait [#allocation9], 512  }
  0x4b   :  { %724 = vsyncadd [#allocation9], 4294966784  ;;  %v737_v0 = vmov 0.0|0.0   ;;  %vm738_vm0 = vmmov 0   ;;  %v739_v1 = vmov 0.0   ;;  %v84_v2 = vld [vmem:[#allocation8] sm:$0xff] }
  0x4c   :  { %512 = vmatprep.subr.bf16.mxu0 %v737_v0  ;;  %488 = vmatprep.mubr.msk.f32.mxu0 %vm738_vm0, %v739_v1  ;;  %v85_v3 = vld [vmem:[#allocation8 + $0x8] sm:$0xff]  ;;  %v86_v4 = vld [vmem:[#allocation8 + $0x10] sm:$0xff]  ;;  %v87_v6 = vld [vmem:[#allocation8 + $0x18] sm:$0xff]  ;;  %vm88_vm1 = vcmask 261120   ;;  %vm313_vm2 = vcmask 57344   ;;  %vm398_vm3 = vcmask 0  }
  0x4d   :  { %502 = vmatprep.subr.mxu1 %v739_v1  ;;  %504 = vmatprep.mubr.msk.f32.mxu1 %vm738_vm0, %v739_v1  ;;  %v513_v5 = vpack.c.bf16 %v85_v3, %v84_v2  ;;  %v516_v7 = vpack.c.bf16 %v87_v6, %v86_v4  ;;  %v80_v8 = vld [vmem:[#allocation7] sm:$0xff]  ;;  %v81_v9 = vld [vmem:[#allocation7 + $0x8] sm:$0xff]  ;;  %v79_v10 = vld [vmem:[#allocation5] sm:$0xff]  ;;  %vm323_vm4 = vcmask 64512   ;;  %s741_s10 = smov [#allocation10]  }
  0x4e   :  { %v519_v11 = vpack.c.bf16 %v81_v9, %v80_v8  ;;  %v82_v12 = vld [vmem:[#allocation7 + $0x10] sm:$0xff]  ;;  %v83_v13 = vld [vmem:[#allocation7 + $0x18] sm:$0xff]  ;;  %s409_s11 = sshll.u32 %s741_s10, 4  ;;  %s410_s11 = int_to_ptr.vmem [resolvable:$true] %s409_s11 }
  0x4f   :  { %514 = vmatpush3.bf16.msra.mxu0 %v513_v5  ;;  %v522_v14 = vpack.c.bf16 %v83_v13, %v82_v12  ;;  %v78_v15 = vld [vmem:[#allocation2] sm:$0xff] }
  0x50   :  { %515 = vmatprep.subr.bf16.mxu0 %v737_v0  ;;  %v236_v19 = vld [vmem:[%s902_s4] sm:$0x1]  ;;  %s740_s4 = smov [#allocation11]  }
  0x51   :  { %s419_s9 = sshll.u32 %s740_s4, 4  ;;  %s420_s9 = int_to_ptr.vmem [resolvable:$true] %s419_s9 }
  0x52   :  { %s631_s12 = scalar_lea.vmem %s420_s9, 16  ;;  %s635_s13 = scalar_lea.vmem %s420_s9, 32 }
  0x53   :  { %517 = vmatpush3.bf16.msra.mxu0 %v516_v7  ;;  %p632_p4 = scmp.ne.s32.totalorder %s420_s9, %s631_s12  ;;  %p636_p5 = scmp.lt.s32.totalorder %s420_s9, %s420_s9 }
  0x54   :  { %518 = vmatprep.subr.bf16.mxu0 %v737_v0  ;;  %p637_p6 = scmp.lt.s32.totalorder %s635_s13, %s631_s12 }
  0x56   :  { %489 = vmatmul.mubr.msk.f32.vlgmr.msra.gmra.mrb[0].mxu0 %vm88_vm1, %v79_v10  ;;  %p638_p7 = por %p637_p6, %p636_p5 }
  0x57   :  { %520 = vmatpush3.bf16.msra.mxu0 %v519_v11  ;;  %499 = vmatprep.mubr.msk.f32.mxu0 %vm738_vm0, %v739_v1 }
  0x58   :  { %521 = vmatprep.subr.bf16.mxu0 %v737_v0  ;;  %p639_p8 = pnand %p638_p7, %p632_p4 }
  0x5b   :  { %523 = vmatpush3.bf16.msra.mxu0 %v522_v14 }
  0x5e   :  { %500 = vmatmul.mubr.msk.f32.vlgmr.msra.gmra.mrb[0].mxu0 %vm88_vm1, %v78_v15 }
 0x131   :  { %v231_v16 = vpop.f32.mrb[0].mxu0 }
 0x132   :  { %539 = vtanh.f32 %v231_v16  ;;  %v501_v17 = vpop.f32.mrb[1].mxu0 }
 0x13c   :  { %v540_v18 = vpop.eup %539 }
 0x13d   :  { %503 = vmatpush3.xpose.msk.msra.mxu1 %vm88_vm1, %v540_v18 }
 0x13e   :  { %507 = vmatprep.subr.mxu1 %v739_v1 }
 0x140   :  { %505 = vmatmul.mubr.msk.f32.vlgmr.msra.gmra.mrb[0].mxu1 %vm88_vm1, %v236_v19 }
 0x141   :  { %508 = vmatpush3.msra.mxu1 %v78_v15  ;;  %509 = vmatprep.mubr.msk.f32.mxu1 %vm738_vm0, %v739_v1 }
 0x213   :  { %v309_v20 = vpop.f32.mrb[0].mxu1 }
 0x214   :  { %v506_v21 = vpop.f32.mrb[1].mxu1  ;;  %v314_v22 = vsel %vm313_vm2, %v309_v20, -inf }
 0x215   :  { %315 = vmax.xlane.f32.xlu0 %v314_v22 }
 0x2a2   :  { %v316_v23 = vpop.xlane.xlu0 %315 }
 0x2a3   :  { %v317_v24 = vsub.f32 %v309_v20, %v316_v23  ;;  %399 = vst.msk [vmem:[#allocation11] sm:$0x1] %vm398_vm3, %v316_v23 }
 0x2a5   :  { %v318_v25 = vmul.f32 1.442695, %v317_v24 }
 0x2a7   :  { %541 = vpow2.f32 %v318_v25 }
 0x2b1   :  { %v542_v26 = vpop.eup %541 }
 0x2b2   :  { %397 = vst.msk [vmem:[#allocation10] sm:$0x1] %vm313_vm2, %v542_v26  ;;  %510 = vmatmul.mubr.msk.f32.vlgmr.msra.gmra.mrb[2].mxu1 %vm323_vm4, %v542_v26  ;;  %v320_v27 = vsel %vm313_vm2, %v542_v26, 0.0 }
 0x2b3   :  { %321 = vadd.xlane.f32.xlu0 %v320_v27 }
 0x2b4   :  { %642 = shalt.err (!%p639_p8)
}
 0x2b5   :  { %s643_s16 = scalar_lea.hbm %s904_s6, 16 }
 0x2b6   :  { %p644_p9 = scmp.ne.s32.totalorder %s904_s6, %s643_s16  ;;  %p647_p10 = scmp.lt.u32.totalorder %s643_s16, %s904_s6 }
 0x2b8   :  { %p649_p11 = pnand %p647_p10, %p644_p9 }
 0x2ba   :  { %652 = shalt.err (!%p649_p11)
}
 0x2bb   :  { %422 = dma.vmem_to_hbm [thread:$0]  %s420_s9, 16, %s904_s6, [#allocation12]  }
 0x2bc   :  { %s653_s21 = scalar_lea.vmem %s410_s11, 16  ;;  %s657_s22 = scalar_lea.vmem %s410_s11, 32 }
 0x2bd   :  { %p654_p12 = scmp.ne.s32.totalorder %s410_s11, %s653_s21  ;;  %p658_p13 = scmp.lt.s32.totalorder %s410_s11, %s410_s11 }
 0x2be   :  { %p659_p0 = scmp.lt.s32.totalorder %s657_s22, %s653_s21 }
 0x2c0   :  { %p660_p1 = por %p659_p0, %p658_p13 }
 0x2c2   :  { %p661_p2 = pnand %p660_p1, %p654_p12 }
 0x2c4   :  { %664 = shalt.err (!%p661_p2)
}
 0x2c5   :  { %s665_s25 = scalar_lea.hbm %s903_s5, 16 }
 0x2c6   :  { %p666_p3 = scmp.ne.s32.totalorder %s903_s5, %s665_s25  ;;  %p669_p4 = scmp.lt.u32.totalorder %s665_s25, %s903_s5 }
 0x2c8   :  { %p671_p5 = pnand %p669_p4, %p666_p3 }
 0x2ca   :  { %674 = shalt.err (!%p671_p5)
}
 0x2cb   :  { %412 = dma.vmem_to_hbm [thread:$0]  %s410_s11, 16, %s903_s5, [#allocation4]  }
 0x2cc   :  { %s742_s3 = smov [#allocation13]  }
 0x2cd   :  { %s429_s29 = sshll.u32 %s742_s3, 4  ;;  %s430_s29 = int_to_ptr.vmem [resolvable:$true] %s429_s29 }
 0x2ce   :  { %s675_s4 = scalar_lea.vmem %s430_s29, 16  ;;  %s679_s9 = scalar_lea.vmem %s430_s29, 32 }
 0x2cf   :  { %p676_p6 = scmp.ne.s32.totalorder %s430_s29, %s675_s4  ;;  %p680_p7 = scmp.lt.s32.totalorder %s430_s29, %s430_s29 }
 0x2d0   :  { %p681_p8 = scmp.lt.s32.totalorder %s679_s9, %s675_s4 }
 0x2d2   :  { %p682_p9 = por %p681_p8, %p680_p7 }
 0x2d4   :  { %p683_p10 = pnand %p682_p9, %p676_p6 }
 0x340   :  { %v322_v28 = vpop.xlane.xlu0 %321 }
 0x341   :  { %400 = vst.msk [vmem:[#allocation13] sm:$0x1] %vm398_vm3, %v322_v28 }
 0x342   :  { %686 = shalt.err (!%p683_p10)
}
 0x343   :  { %s687_s13 = scalar_lea.hbm %s905_s7, 16 }
 0x344   :  { %p688_p11 = scmp.ne.s32.totalorder %s905_s7, %s687_s13  ;;  %p691_p12 = scmp.lt.u32.totalorder %s687_s13, %s905_s7 }
 0x346   :  { %p693_p13 = pnand %p691_p12, %p688_p11 }
 0x348   :  { %696 = shalt.err (!%p693_p13)
}
 0x349   :  { %432 = dma.vmem_to_hbm [thread:$0]  %s430_s29, 16, %s905_s7, [#allocation12]   ;;  %vm401_vm5 = vcmask 253952  }
 0x34a   :  { %s743_s30 = smov [#allocation14]  }
 0x34b   :  { %s439_s17 = sshll.u32 %s743_s30, 4  ;;  %s440_s17 = int_to_ptr.vmem [resolvable:$true] %s439_s17 }
 0x34c   :  { %s697_s18 = scalar_lea.vmem %s440_s17, 16  ;;  %s701_s19 = scalar_lea.vmem %s440_s17, 32 }
 0x34d   :  { %p698_p0 = scmp.ne.s32.totalorder %s440_s17, %s697_s18  ;;  %p702_p1 = scmp.lt.s32.totalorder %s440_s17, %s440_s17 }
 0x34e   :  { %p703_p2 = scmp.lt.s32.totalorder %s701_s19, %s697_s18 }
 0x350   :  { %p704_p3 = por %p703_p2, %p702_p1 }
 0x352   :  { %p705_p4 = pnand %p704_p3, %p698_p0 }
 0x385   :  { %v393_v29 = vpop.f32.mrb[2].mxu1 }
 0x386   :  { %v511_v30 = vpop.f32.mrb[3].mxu1  ;;  %402 = vst.msk [vmem:[#allocation14] sm:$0x1] %vm401_vm5, %v393_v29 }
 0x387   :  { %708 = shalt.err (!%p705_p4)
}
 0x388   :  { %s709_s22 = scalar_lea.hbm %s906_s8, 16 }
 0x389   :  { %p710_p5 = scmp.ne.s32.totalorder %s906_s8, %s709_s22  ;;  %p713_p6 = scmp.lt.u32.totalorder %s709_s22, %s906_s8 }
 0x38b   :  { %p715_p7 = pnand %p713_p6, %p710_p5 }
 0x38d   :  { %718 = shalt.err (!%p715_p7)
}
 0x38e   :  { %442 = dma.vmem_to_hbm [thread:$0]  %s440_s17, 16, %s906_s8, [#allocation15]  }
 0x38f   :  { %725 = dma.done.wait [#allocation4], 16  }
 0x390   :  { %726 = vsyncadd [#allocation4], 4294967280 }
 0x391   :  { %727 = dma.done.wait [#allocation12], 32  }
 0x392   :  { %728 = vsyncadd [#allocation12], 4294967264 }
 0x393   :  { %729 = dma.done.wait [#allocation15], 16  }
 0x394   :  { %730 = vsyncadd [#allocation15], 4294967280 }
 0x395   :  { %455 = vsyncpa [#allocation3], 1 }
 0x396   :  { %456 = vsyncpa [#allocation6], 1 }
 0x397   :  { %457 = vsyncpa [#allocation9], 1 }
 0x398   :  { %458 = vsyncpa [#allocation4], 1 }
 0x399   :  { %459 = vsyncpa [#allocation12], 1 }
 0x39a   :  { %460 = vsyncpa [#allocation15], 1 }

</bundles_post_ra>
